<compile_context>
chip_gen: v7x
topology: tpu7x:2x2x1
jax: 0.10.0
libtpu: 0.0.40
codegen_flags: <defaults>
</compile_context>

<pallas_src>
import functools

import jax
import jax.numpy as jnp
from jax import lax
from jax.experimental import pallas as pl
from jax.experimental.pallas import tpu as pltpu


def _round_up(x, m):
    return (x + m - 1) // m * m


def _temporal_block_kernel(*refs, K, dilation, pad, P, tile_t, identity_residual):
    if identity_residual:
        xh_ref, xc_ref, w1_ref, b1_ref, w2_ref, b2_ref, o_ref = refs
    else:
        (xh_ref, xc_ref, w1_ref, b1_ref, w2_ref, b2_ref,
         wd_ref, bd_ref, o_ref) = refs

    tj = pl.program_id(1)                     # time-tile index
    C_out = b1_ref.shape[0]
    Tq = tile_t + P                           # conv1 computed over tile + P left cols
    base = P - pad                            # column offset of conv tap 0 in its window

    xcur = xc_ref[0]                          # (Ci, tile_t) current tile
    xh = xh_ref[0]                            # (Ci, H) last H cols of previous tile
    # Tile 0: everything left of global t=0 is causal zero padding.
    xh = jnp.where(tj == 0, jnp.zeros_like(xh), xh)
    xe = jnp.concatenate([xh, xcur], axis=-1)            # (Ci, H + tile_t), halo-only

    # ---- conv1: K dilated taps folded into one (C_out,K*Ci) x (K*Ci,Tq) MXU matmul ----
    rhs1 = jnp.concatenate(
        [xe[:, base + k * dilation: base + k * dilation + Tq] for k in range(K)],
        axis=0)
    h1 = jnp.dot(w1_ref[...], rhs1, preferred_element_type=jnp.float32) + b1_ref[...]
    h1 = jnp.maximum(h1, 0.0)

    # Columns at global time < 0 are conv2's causal padding -> must be zero. Only
    # tile 0 has such columns, so the mask is gated off every steady-state tile.
    def _zero_left(h):
        u = lax.broadcasted_iota(jnp.int32, h.shape, 1)
        return jnp.where(u >= P, h, 0.0)
    h1 = lax.cond(tj == 0, _zero_left, lambda h: h, h1)

    # TODO(synk): dropout1 / dropout2 implemented as identity (eval mode).
    if xcur.dtype != jnp.float32:
        h1 = h1.astype(xcur.dtype)            # bf16 path feeds bf16 to the MXU

    # ---- conv2: same stacked-tap single matmul, over the current tile only ----
    rhs2 = jnp.concatenate(
        [h1[:, base + k * dilation: base + k * dilation + tile_t] for k in range(K)],
        axis=0)
    h2 = jnp.dot(w2_ref[...], rhs2, preferred_element_type=jnp.float32) + b2_ref[...]
    h2 = jnp.maximum(h2, 0.0)

    # ---- residual branch ----
    if identity_residual:
        res = xcur[:C_out].astype(jnp.float32)        # skip the eye-weight matmul
    else:
        res = (jnp.dot(wd_ref[...], xcur, preferred_element_type=jnp.float32)
               + bd_ref[...])

    o_ref[0] = jnp.maximum(h2 + res, 0.0).astype(o_ref.dtype)


def temporal_block(x, params, *, kernel_size, dilation, tile_t=1024,
                   compute_dtype=None):
    """x: (B, C_in, T). Returns (B, C_out, T) in x.dtype.

    params = (w1, b1, w2, b2, wd, bd) with weight_norm already resolved.
    When C_in == C_out the residual is the identity (wd/bd are ignored),
    matching the PyTorch module where `downsample is None`.
    """
    B, C_in, T = x.shape
    K = kernel_size
    pad = (K - 1) * dilation
    w1, b1, w2, b2, wd, bd = params           # w1:(C_out,C_in,K) w2:(C_out,C_out,K)
    C_out = w1.shape[0]
    identity_residual = (C_in == C_out)
    cdt = jnp.dtype(x.dtype if compute_dtype is None else compute_dtype)

    # Pad input channels (MXU contraction dim): sublane multiple 8 (f32) / 16 (bf16).
    sub = 16 if cdt == jnp.dtype(jnp.bfloat16) else 8
    Ci = _round_up(C_in, sub)
    if Ci != C_in:
        w1 = jnp.pad(w1, ((0, 0), (0, Ci - C_in), (0, 0)))
        if not identity_residual:
            wd = jnp.pad(wd, ((0, 0), (0, Ci - C_in)))
    # TODO(synk): for bf16 also pad C_out to 16 (pad w2/b*, slice output channels);
    # and for very large C_out (>=512) add a C_out grid axis so w2s is not fully
    # resident per step. The f32 demo path does not need either.

    # Lane-aligned over-compute / halo widths (multiples of 128).
    P = _round_up(max(pad, 1), 128)   # conv1 left over-compute (context conv2 needs)
    H = 2 * P                         # input halo carried from the previous tile (>= P + pad)

    # Time tiling: tile_t is a multiple of H (hence 128-lane aligned), auto-grown for
    # deep-dilation levels, and not inflated far beyond T.
    tile_t = max(H, _round_up(min(max(tile_t, 128), _round_up(T, 128)), H))
    n_t = pl.cdiv(T, tile_t)
    Tpad = n_t * tile_t
    r = tile_t // H                   # halo blocks per time tile

    # Right-pad only; the causal left boundary of tile 0 is synthesized in-kernel.
    xp = jnp.pad(x, ((0, 0), (0, Ci - C_in), (0, Tpad - T))).astype(cdt)

    # Fold the K dilated taps into the weight contraction dim (tap-major).
    w1s = jnp.transpose(w1, (0, 2, 1)).reshape(C_out, K * Ci).astype(cdt)
    w2s = jnp.transpose(w2, (0, 2, 1)).reshape(C_out, K * C_out).astype(cdt)
    b1c = b1.reshape(C_out, 1).astype(jnp.float32)
    b2c = b2.reshape(C_out, 1).astype(jnp.float32)

    inputs = [xp, xp, w1s, b1c, w2s, b2c]
    in_specs = [
        # Halo: only the last H lanes of the previous tile (never the full tile), so
        # each input tile is DMA'd once plus an H-wide sliver (~1 + H/tile_t traffic).
        pl.BlockSpec((1, Ci, H), lambda b, j: (b, 0, jnp.maximum(j * r - 1, 0))),
        # Current time tile.
        pl.BlockSpec((1, Ci, tile_t), lambda b, j: (b, 0, j)),
        pl.BlockSpec((C_out, K * Ci), lambda b, j: (0, 0)),
        pl.BlockSpec((C_out, 1), lambda b, j: (0, 0)),
        pl.BlockSpec((C_out, K * C_out), lambda b, j: (0, 0)),
        pl.BlockSpec((C_out, 1), lambda b, j: (0, 0)),
    ]
    if not identity_residual:
        inputs += [wd.astype(cdt), bd.reshape(C_out, 1).astype(jnp.float32)]
        in_specs += [pl.BlockSpec((C_out, Ci), lambda b, j: (0, 0)),
                     pl.BlockSpec((C_out, 1), lambda b, j: (0, 0))]

    # Explicit VMEM budget (v7x has 64 MiB physical vs 128 MiB on v5e/v6e):
    # double-buffered activation tiles + double-buffered weights + f32 temporaries.
    isz = jnp.dtype(cdt).itemsize
    Tq = tile_t + P
    est = (2 * (Ci * H + Ci * tile_t + C_out * tile_t) * isz
           + 2 * (C_out * K * Ci + C_out * K * C_out + C_out * Ci) * isz
           + 4 * (K * Ci * Tq + 2 * C_out * Tq + K * C_out * tile_t
                  + 2 * C_out * tile_t))
    vmem_limit = int(min(64 * 2 ** 20, max(32 * 2 ** 20, 2 * est)))

    kern = functools.partial(_temporal_block_kernel, K=K, dilation=dilation, pad=pad,
                             P=P, tile_t=tile_t,
                             identity_residual=identity_residual)
    out = pl.pallas_call(
        kern,
        out_shape=jax.ShapeDtypeStruct((B, C_out, Tpad), x.dtype),
        grid_spec=pltpu.PrefetchScalarGridSpec(
            num_scalar_prefetch=0,
            grid=(B, n_t),
            in_specs=in_specs,
            out_specs=pl.BlockSpec((1, C_out, tile_t), lambda b, j: (b, 0, j)),
        ),
        compiler_params=pltpu.CompilerParams(
            # Batch and time tiles are fully independent (halo recompute), so both
            # grid axes can shard across v7x's two TensorCores. With B == 1 keep
            # n_t >= 2 (don't inflate tile_t to a single tile) so no core idles.
            dimension_semantics=("parallel", "parallel"),
            vmem_limit_bytes=vmem_limit),
    )(*inputs)
    return out[:, :, :T]


def make_params(key, C_in, C_out, K):
    """Deterministic synthetic params; weight_norm resolved to effective weights."""
    ks = jax.random.split(key, 8)

    def wn(v, g):  # weight_norm(dim=0): per-output-channel norm over (in, k)
        nrm = jnp.sqrt(jnp.sum(v * v, axis=(1, 2), keepdims=True))
        return g[:, None, None] * v / nrm

    v1 = 0.01 * jax.random.normal(ks[0], (C_out, C_in, K), jnp.float32)
    g1 = 0.5 + jax.random.uniform(ks[1], (C_out,), jnp.float32)
    b1 = 0.1 * jax.random.normal(ks[2], (C_out,), jnp.float32)
    v2 = 0.01 * jax.random.normal(ks[3], (C_out, C_out, K), jnp.float32)
    g2 = 0.5 + jax.random.uniform(ks[4], (C_out,), jnp.float32)
    b2 = 0.1 * jax.random.normal(ks[5], (C_out,), jnp.float32)
    w1 = wn(v1, g1)
    w2 = wn(v2, g2)
    if C_in != C_out:
        wd = 0.01 * jax.random.normal(ks[6], (C_out, C_in), jnp.float32)
        bd = 0.1 * jax.random.normal(ks[7], (C_out,), jnp.float32)
    else:  # downsample is None -> identity residual (eye weight for the reference)
        wd = jnp.eye(C_out, dtype=jnp.float32)
        bd = jnp.zeros((C_out,), jnp.float32)
    return w1, b1, w2, b2, wd, bd


def ref_temporal_block(x, params, *, kernel_size, dilation):
    """Pure-JAX reference (lax.conv), mirrors the PyTorch forward exactly."""
    w1, b1, w2, b2, wd, bd = params
    pad = (kernel_size - 1) * dilation
    T = x.shape[2]

    def conv(h, w, b):
        y = lax.conv_general_dilated(h, w, window_strides=(1,),
                                     padding=[(pad, pad)],
                                     rhs_dilation=(dilation,),
                                     dimension_numbers=("NCH", "OIH", "NCH"))
        return y[:, :, :T] + b[None, :, None]        # Chomp1d: drop the right pad

    h = jnp.maximum(conv(x, w1, b1), 0.0)
    h = jnp.maximum(conv(h, w2, b2), 0.0)
    res = jnp.einsum("oc,bct->bot", wd, x) + bd[None, :, None]
    return jnp.maximum(h + res, 0.0)


if __name__ == "__main__":
    key = jax.random.PRNGKey(0)
    configs = [
        # (B, C_in, C_out, T, K, dilation, tile_t)
        (2, 4, 8, 16, 3, 2, 1024),    # downsample residual, single time tile
        (2, 8, 8, 16, 3, 4, 1024),    # identity residual (C_in == C_out)
        (2, 4, 8, 600, 3, 4, 256),    # multi-tile: halo path + tile-0 mask + right pad
    ]
    for i, (B, C_in, C_out, T, K, dil, tt) in enumerate(configs):
        kx, kp, key = jax.random.split(key, 3)
        x = jax.random.normal(kx, (B, C_in, T), jnp.float32)
        params = make_params(kp, C_in, C_out, K)

        out = temporal_block(x, params, kernel_size=K, dilation=dil, tile_t=tt)
        out = jax.block_until_ready(out)

        ref = ref_temporal_block(x, params, kernel_size=K, dilation=dil)
        assert out.shape == (B, C_out, T)
        err = float(jnp.max(jnp.abs(out - ref)))
        assert jnp.allclose(out, ref, atol=1e-5, rtol=1e-5), (
            f"config {i}: max err {err}")
    print("KERNEL_OK")
</pallas_src>

<mosaic_0001>
module attributes {stable_mosaic.version = 11 : i64} {
  func.func @_temporal_block_kernel(%arg0: i32, %arg1: i32, %arg2: memref<1x8x256xf32, #tpu.memory_space<vmem>>, %arg3: memref<1x8x256xf32, #tpu.memory_space<vmem>>, %arg4: memref<8x24xf32, #tpu.memory_space<vmem>>, %arg5: memref<8x1xf32, #tpu.memory_space<vmem>>, %arg6: memref<8x24xf32, #tpu.memory_space<vmem>>, %arg7: memref<8x1xf32, #tpu.memory_space<vmem>>, %arg8: memref<8x8xf32, #tpu.memory_space<vmem>>, %arg9: memref<8x1xf32, #tpu.memory_space<vmem>>, %arg10: memref<1x8x256xf32, #tpu.memory_space<vmem>>) attributes {dimension_semantics = [#tpu.dimension_semantics<parallel>, #tpu.dimension_semantics<parallel>], iteration_bounds = array<i64: 2, 1>, scalar_prefetch = 0 : i64, scratch_operands = 0 : i64, tpu.core_type = #tpu.core_type<tc>, window_params = [{transform_indices = @transform_0, window_bounds = array<i64: 1, 8, 256>}, {transform_indices = @transform_1, window_bounds = array<i64: 1, 8, 256>}, {pipeline_mode = #tpu.pipeline_mode<synchronous>, transform_indices = @transform_2, window_bounds = array<i64: 8, 24>}, {pipeline_mode = #tpu.pipeline_mode<synchronous>, transform_indices = @transform_3, window_bounds = array<i64: 8, 1>}, {pipeline_mode = #tpu.pipeline_mode<synchronous>, transform_indices = @transform_4, window_bounds = array<i64: 8, 24>}, {pipeline_mode = #tpu.pipeline_mode<synchronous>, transform_indices = @transform_5, window_bounds = array<i64: 8, 1>}, {pipeline_mode = #tpu.pipeline_mode<synchronous>, transform_indices = @transform_6, window_bounds = array<i64: 8, 8>}, {pipeline_mode = #tpu.pipeline_mode<synchronous>, transform_indices = @transform_7, window_bounds = array<i64: 8, 1>}, {transform_indices = @transform_8, window_bounds = array<i64: 1, 8, 256>}]} {
    %c0 = arith.constant 0 : index
    %c0_0 = arith.constant 0 : index
    %c0_1 = arith.constant 0 : index
    %0 = vector.load %arg3[%c0, %c0_0, %c0_1] : memref<1x8x256xf32, #tpu.memory_space<vmem>>, vector<1x8x256xf32>
    %1 = vector.shape_cast %0 : vector<1x8x256xf32> to vector<8x256xf32>
    %c0_2 = arith.constant 0 : index
    %c0_3 = arith.constant 0 : index
    %c0_4 = arith.constant 0 : index
    %2 = vector.load %arg2[%c0_2, %c0_3, %c0_4] : memref<1x8x256xf32, #tpu.memory_space<vmem>>, vector<1x8x256xf32>
    %3 = vector.shape_cast %2 : vector<1x8x256xf32> to vector<8x256xf32>
    %c0_i32 = arith.constant 0 : i32
    %4 = arith.cmpi eq, %arg1, %c0_i32 : i32
    %cst = arith.constant 0.000000e+00 : f32
    %5 = vector.broadcast %cst : f32 to vector<8x256xf32>
    %6 = arith.select %4, %5, %3 : vector<8x256xf32>
    %7 = tpu.concatenate %6, %1 in 1 : vector<8x256xf32>, vector<8x256xf32> -> vector<8x512xf32>
    %8 = vector.extract_strided_slice %7 {offsets = [0, 124], sizes = [8, 384], strides = [1, 1]} : vector<8x512xf32> to vector<8x384xf32>
    %9 = vector.extract_strided_slice %7 {offsets = [0, 126], sizes = [8, 384], strides = [1, 1]} : vector<8x512xf32> to vector<8x384xf32>
    %10 = vector.extract_strided_slice %7 {offsets = [0, 128], sizes = [8, 384], strides = [1, 1]} : vector<8x512xf32> to vector<8x384xf32>
    %11 = tpu.concatenate %8, %9, %10 in 0 : vector<8x384xf32>, vector<8x384xf32>, vector<8x384xf32> -> vector<24x384xf32>
    %c0_5 = arith.constant 0 : index
    %c0_6 = arith.constant 0 : index
    %12 = vector.load %arg4[%c0_5, %c0_6] : memref<8x24xf32, #tpu.memory_space<vmem>>, vector<8x24xf32>
    %cst_7 = arith.constant dense<0.000000e+00> : vector<8x384xf32>
    %13 = tpu.matmul %12, %11, %cst_7 {dimension_numbers = #tpu.dot_dimension_numbers<[1], [0], [0], [1], [0, 0, 1, 1], [], []>} : vector<8x24xf32>, vector<24x384xf32>, vector<8x384xf32> -> vector<8x384xf32>
    %c0_8 = arith.constant 0 : index
    %c0_9 = arith.constant 0 : index
    %14 = vector.load %arg5[%c0_8, %c0_9] : memref<8x1xf32, #tpu.memory_space<vmem>>, vector<8x1xf32>
    %15 = vector.broadcast %14 : vector<8x1xf32> to vector<8x384xf32>
    %16 = arith.addf %13, %15 : vector<8x384xf32>
    %cst_10 = arith.constant 0.000000e+00 : f32
    %17 = vector.broadcast %cst_10 : f32 to vector<8x384xf32>
    %18 = arith.maximumf %16, %17 : vector<8x384xf32>
    %c0_i32_11 = arith.constant 0 : i32
    %19 = arith.cmpi eq, %arg1, %c0_i32_11 : i32
    %20 = arith.extui %19 : i1 to i32
    %c0_i32_12 = arith.constant 0 : i32
    %21 = arith.cmpi ne, %20, %c0_i32_12 : i32
    %22 = scf.if %21 -> (vector<8x384xf32>) {
      %45 = tpu.iota {dimensions = array<i32: 1>} : vector<8x384xi32>
      %c128_i32 = arith.constant 128 : i32
      %46 = vector.broadcast %c128_i32 : i32 to vector<8x384xi32>
      %47 = arith.cmpi sge, %45, %46 : vector<8x384xi32>
      %cst_28 = arith.constant 0.000000e+00 : f32
      %48 = vector.broadcast %cst_28 : f32 to vector<8x384xf32>
      %49 = arith.select %47, %18, %48 : vector<8x384xi1>, vector<8x384xf32>
      scf.yield %49 : vector<8x384xf32>
    } else {
      scf.yield %18 : vector<8x384xf32>
    }
    %23 = vector.extract_strided_slice %22 {offsets = [0, 124], sizes = [8, 256], strides = [1, 1]} : vector<8x384xf32> to vector<8x256xf32>
    %24 = vector.extract_strided_slice %22 {offsets = [0, 126], sizes = [8, 256], strides = [1, 1]} : vector<8x384xf32> to vector<8x256xf32>
    %25 = vector.extract_strided_slice %22 {offsets = [0, 128], sizes = [8, 256], strides = [1, 1]} : vector<8x384xf32> to vector<8x256xf32>
    %26 = tpu.concatenate %23, %24, %25 in 0 : vector<8x256xf32>, vector<8x256xf32>, vector<8x256xf32> -> vector<24x256xf32>
    %c0_13 = arith.constant 0 : index
    %c0_14 = arith.constant 0 : index
    %27 = vector.load %arg6[%c0_13, %c0_14] : memref<8x24xf32, #tpu.memory_space<vmem>>, vector<8x24xf32>
    %cst_15 = arith.constant dense<0.000000e+00> : vector<8x256xf32>
    %28 = tpu.matmul %27, %26, %cst_15 {dimension_numbers = #tpu.dot_dimension_numbers<[1], [0], [0], [1], [0, 0, 1, 1], [], []>} : vector<8x24xf32>, vector<24x256xf32>, vector<8x256xf32> -> vector<8x256xf32>
    %c0_16 = arith.constant 0 : index
    %c0_17 = arith.constant 0 : index
    %29 = vector.load %arg7[%c0_16, %c0_17] : memref<8x1xf32, #tpu.memory_space<vmem>>, vector<8x1xf32>
    %30 = vector.broadcast %29 : vector<8x1xf32> to vector<8x256xf32>
    %31 = arith.addf %28, %30 : vector<8x256xf32>
    %cst_18 = arith.constant 0.000000e+00 : f32
    %32 = vector.broadcast %cst_18 : f32 to vector<8x256xf32>
    %33 = arith.maximumf %31, %32 : vector<8x256xf32>
    %c0_19 = arith.constant 0 : index
    %c0_20 = arith.constant 0 : index
    %34 = vector.load %arg8[%c0_19, %c0_20] : memref<8x8xf32, #tpu.memory_space<vmem>>, vector<8x8xf32>
    %cst_21 = arith.constant dense<0.000000e+00> : vector<8x256xf32>
    %35 = tpu.matmul %34, %1, %cst_21 {dimension_numbers = #tpu.dot_dimension_numbers<[1], [0], [0], [1], [0, 0, 1, 1], [], []>} : vector<8x8xf32>, vector<8x256xf32>, vector<8x256xf32> -> vector<8x256xf32>
    %c0_22 = arith.constant 0 : index
    %c0_23 = arith.constant 0 : index
    %36 = vector.load %arg9[%c0_22, %c0_23] : memref<8x1xf32, #tpu.memory_space<vmem>>, vector<8x1xf32>
    %37 = vector.broadcast %36 : vector<8x1xf32> to vector<8x256xf32>
    %38 = arith.addf %35, %37 : vector<8x256xf32>
    %39 = arith.addf %33, %38 : vector<8x256xf32>
    %cst_24 = arith.constant 0.000000e+00 : f32
    %40 = vector.broadcast %cst_24 : f32 to vector<8x256xf32>
    %41 = arith.maximumf %39, %40 : vector<8x256xf32>
    %c0_25 = arith.constant 0 : index
    %c0_26 = arith.constant 0 : index
    %c0_27 = arith.constant 0 : index
    %42 = vector.load %arg10[%c0_25, %c0_26, %c0_27] : memref<1x8x256xf32, #tpu.memory_space<vmem>>, vector<1x8x256xf32>
    %43 = vector.shape_cast %42 : vector<1x8x256xf32> to vector<8x256xf32>
    %44 = vector.shape_cast %41 : vector<8x256xf32> to vector<1x8x256xf32>
    tpu.vector_store %arg10[%c0_25, %c0_26, %c0_27], %44 {strides = array<i32>} : memref<1x8x256xf32, #tpu.memory_space<vmem>>, vector<1x8x256xf32>,
    return
  }
  func.func @transform_0(%arg0: i32, %arg1: i32) -> (i32, i32, i32) {
    %c1_i32 = arith.constant 1 : i32
    %0 = arith.muli %arg1, %c1_i32 : i32
    %c1_i32_0 = arith.constant 1 : i32
    %1 = arith.subi %0, %c1_i32_0 : i32
    %c0_i32 = arith.constant 0 : i32
    %2 = arith.maxsi %1, %c0_i32 : i32
    %c0_i32_1 = arith.constant 0 : i32
    %c0_i32_2 = arith.constant 0 : i32
    return %arg0, %c0_i32_1, %2 : i32, i32, i32
  }
  func.func @transform_1(%arg0: i32, %arg1: i32) -> (i32, i32, i32) {
    %c0_i32 = arith.constant 0 : i32
    %c0_i32_0 = arith.constant 0 : i32
    return %arg0, %c0_i32, %arg1 : i32, i32, i32
  }
  func.func @transform_2(%arg0: i32, %arg1: i32) -> (i32, i32) {
    %c0_i32 = arith.constant 0 : i32
    %c0_i32_0 = arith.constant 0 : i32
    %c0_i32_1 = arith.constant 0 : i32
    return %c0_i32, %c0_i32_0 : i32, i32
  }
  func.func @transform_3(%arg0: i32, %arg1: i32) -> (i32, i32) {
    %c0_i32 = arith.constant 0 : i32
    %c0_i32_0 = arith.constant 0 : i32
    %c0_i32_1 = arith.constant 0 : i32
    return %c0_i32, %c0_i32_0 : i32, i32
  }
  func.func @transform_4(%arg0: i32, %arg1: i32) -> (i32, i32) {
    %c0_i32 = arith.constant 0 : i32
    %c0_i32_0 = arith.constant 0 : i32
    %c0_i32_1 = arith.constant 0 : i32
    return %c0_i32, %c0_i32_0 : i32, i32
  }
  func.func @transform_5(%arg0: i32, %arg1: i32) -> (i32, i32) {
    %c0_i32 = arith.constant 0 : i32
    %c0_i32_0 = arith.constant 0 : i32
    %c0_i32_1 = arith.constant 0 : i32
    return %c0_i32, %c0_i32_0 : i32, i32
  }
  func.func @transform_6(%arg0: i32, %arg1: i32) -> (i32, i32) {
    %c0_i32 = arith.constant 0 : i32
    %c0_i32_0 = arith.constant 0 : i32
    %c0_i32_1 = arith.constant 0 : i32
    return %c0_i32, %c0_i32_0 : i32, i32
  }
  func.func @transform_7(%arg0: i32, %arg1: i32) -> (i32, i32) {
    %c0_i32 = arith.constant 0 : i32
    %c0_i32_0 = arith.constant 0 : i32
    %c0_i32_1 = arith.constant 0 : i32
    return %c0_i32, %c0_i32_0 : i32, i32
  }
  func.func @transform_8(%arg0: i32, %arg1: i32) -> (i32, i32, i32) {
    %c0_i32 = arith.constant 0 : i32
    %c0_i32_0 = arith.constant 0 : i32
    return %arg0, %c0_i32, %arg1 : i32, i32, i32
  }
}

</mosaic_0001>

<bundles_post_ra>
// kernel: tpu_custom_call.1
= control target key start
LH: loop header
LB: loop body
LE: loop exit
PB: predicated region body
PF: predicated region fallthrough
CT: control target
= control target key end

     0   :  { %s1688_s0 = inlined_call_operand.hbm [shape: f32[2,8,256], index: 0, kind: input, shape index: {}]   ;;  %s1689_s1 = inlined_call_operand.hbm [shape: f32[2,8,256], index: 1, kind: input, shape index: {}]   ;;  %s1690_s2 = inlined_call_operand.vmem [shape: f32[8,24], index: 2, kind: input, shape index: {}]   ;;  %s1691_s3 = inlined_call_operand.vmem [shape: f32[8,1], index: 3, kind: input, shape index: {}]   ;;  %s1692_s4 = inlined_call_operand.vmem [shape: f32[8,24], index: 4, kind: input, shape index: {}]   ;;  %s1693_s5 = inlined_call_operand.vmem [shape: f32[8,1], index: 5, kind: input, shape index: {}]   ;;  %s1694_s6 = inlined_call_operand.vmem [shape: f32[8,8], index: 6, kind: input, shape index: {}]   ;;  %s1695_s7 = inlined_call_operand.vmem [shape: f32[8,1], index: 7, kind: input, shape index: {}]   ;;  %s1696_s8 = inlined_call_operand.hbm [shape: f32[2,8,256], index: 8, kind: output, shape index: {}]  }
   0x1   :  { %1703 = sst [smem:[#allocation13_spill]] %s1688_s0 }
   0x2   :  { %13 = vsyncpa [#allocation3], 0 }
   0x3   :  { %15 = vsyncpa [#allocation3 + $0x1], 0 }
   0x4   :  { %16 = vsyncpa [#allocation6], 0 }
   0x5   :  { %18 = vsyncpa [#allocation6 + $0x1], 0 }
   0x6   :  { %19 = vsyncpa [#allocation4], 0 }
   0x7   :  { %21 = vsyncpa [#allocation4 + $0x1], 0  ;;  %s1375_s27 = smov 0   ;;  %s1377_s28 = smov 0  }
   0x8   :  { %s1379_s29 = smov 0   ;;  %s1381_s30 = smov 0  }
   0x9   :  { %s1383_s9 = smov 0   ;;  %s1385_s10 = smov 0  }
   0xa LB: > { %1704 = sst [smem:[#allocation11_spill]] %s1314_s9  ;;  %s996_s11 = sadd.s32 4294967295, %s1318_s10   ;;  %s1318_s10 = sphi %s1385_s10, %s27_s10   ;;  %s1314_s9 = sphi %s1383_s9, %s1723_s9   ;;  %s1310_s30 = sphi %s1381_s30, %s1722_s30   ;;  %s1306_s29 = sphi %s1379_s29, %s1726_s29   ;;  %s1302_s28 = sphi %s1377_s28, %s1725_s28   ;;  %s1298_s27 = sphi %s1375_s27, %s1724_s27  }
   0xb   : > { %s997_s12 = sadd.s32 4294967294, %s1318_s10   ;;  %s39_s13 = sadd.s32 1, %s1314_s9 }
   0xc   : > { %s54_s14 = sadd.s32 1, %s1306_s29  ;;  %p41_p0 = scmp.ge.s32.totalorder %s39_s13, 2 }
   0xd   : > { %p61_p1 = scmp.ne.s32.totalorder %s1306_s29, %s1302_s28  ;;  %p62_p2 = scmp.eq.s32.totalorder %s1318_s10, 0 }
   0xe   : > { %p67_p3 = scmp.ne.s32.totalorder %s1302_s28, %s1298_s27  ;;  %s1728_s13 = smov (%p41_p0, %s39_s13), 0 }
   0xf   : > { %1705 = sst [smem:[#allocation12_spill]] %s1728_s13  ;;  %p1416_p4 = por %p62_p2, %p61_p1 }
  0x10   : > { %p68_p5 = scmp.eq.s32.totalorder %s996_s11, 0  ;;  %s49_s16 = ssub.s32 %s1314_s9, %s1728_s13 }
  0x11   : > { %p247_p6 = scmp.eq.s32.totalorder %s996_s11, 1  ;;  %p52_p7 = scmp.eq.s32.totalorder %s49_s16, 0 }
  0x12   : > { %p1422_p8 = por %p68_p5, %p67_p3  ;;  %p253_p10 = scmp.eq.s32.totalorder %s997_s12, 1 }
  0x13   : > { %p1426_p9 = por %p247_p6, %p61_p1  ;;  %p1063_p13 = scmp.lt.s32.totalorder %s1318_s10, 2 }
  0x14   : > { %s1707_s17 = scalar_select %p1422_p8, 1, 0 }
  0x15   : > { %s1708_s18 = scalar_select %p1426_p9, 1, 0 }
  0x16   : > { %s1431_s19 = scalar_select %p52_p7, %s1306_s29, %s54_s14  }
  0x17   : > { %p1433_p11 = por %p253_p10, %p67_p3  ;;  %s1440_s21 = sand.u32 1, %s1306_s29  }
  0x18   : > { %s1697_s22 = sshll.u32 %s1440_s21, 4  ;;  %s1698_s23 = sshll.u32 %s1314_s9, 8 }
  0x19   : > { %s1709_s20 = scalar_select %p1433_p11, 1, 0 }
  0x1a   : > { %s1710_s0 = sld [smem:[#allocation13_spill]]  ;;  %s295_s11 = scalar_lea.vmem [#allocation2], %s1697_s22 }
  0x1b   : > { %s308_s12 = sshll.u32 %s295_s11, 4  ;;  %p1457_p0 = pnand %p1063_p13, %p1416_p4  ;;  %s1453_s12 = int_to_ptr.vmem [resolvable:$true] %s308_s12 }
  0x1c   : > { %s292_s16 = scalar_lea.sflag [#allocation3], %s1440_s21 }
  0x1d   : > { %p1174_p5 = pneg %p1457_p0 }
  0x20   : > { %s1449_s26 = scalar_lea.hbm %s1710_s0, %s1698_s23  ;;  %s1177_s15 = scalar_lea.hbm %s1710_s0, 512 }
  0x21   : > { %s1172_s24 = scalar_lea.hbm %s1449_s26, 256  ;;  %p1178_p4 = scmp.lt.u32.totalorder %s1449_s26, %s1710_s0 }
  0x22   : > { %p1173_p3 = scmp.ne.s32.totalorder %s1449_s26, %s1172_s24  ;;  %p1179_p10 = scmp.lt.u32.totalorder %s1177_s15, %s1172_s24 }
  0x23   : > { %p1181_p12 = scmp.lt.u32.totalorder %s1172_s24, %s1449_s26 }
  0x24   : > { %p1175_p6 = pnand %p1174_p5, %p1173_p3  ;;  %p1180_p13 = por %p1179_p10, %p1178_p4 }
  0x26   : > { %p1176_p7 = pneg %p1175_p6  ;;  %p1182_p1 = por %p1181_p12, %p1180_p13 }
  0x28   : > { %p1183_p2 = pnand %p1182_p1, %p1176_p7 }
  0x2a   : > { %1186 = shalt.err (!%p1183_p2)
}
  0x2b   : > { %s1187_s13 = scalar_lea.vmem %s1453_s12, 256  ;;  %s1320_s25 = smov [#allocation2]  }
  0x2c   : > { %p1188_p3 = scmp.ne.s32.totalorder %s1453_s12, %s1187_s13  ;;  %s1192_s11 = sshll.u32 %s1320_s25, 4  ;;  %s1193_s11 = int_to_ptr.vmem [resolvable:$false] %s1192_s11 }
  0x2d   : > { %s1194_s22 = scalar_lea.vmem %s1193_s11, 512  ;;  %p1195_p9 = scmp.lt.s32.totalorder %s1453_s12, %s1193_s11 }
  0x2e   : > { %p1190_p6 = pnand %p1188_p3, %p1174_p5  ;;  %p1196_p4 = scmp.lt.s32.totalorder %s1194_s22, %s1187_s13 }
  0x30   : > { %p1191_p11 = pneg %p1190_p6  ;;  %p1197_p10 = por %p1196_p4, %p1195_p9 }
  0x32   : > { %p1198_p12 = pnand %p1197_p10, %p1191_p11 }
  0x34   : > { %1201 = shalt.err (!%p1198_p12)
}
  0x35   : > { %1055 = dma.hbm_to_vmem [thread:$0]  (!%p1457_p0), %s1449_s26, 256, %s1453_s12, %s292_s16  }
  0x36   : > { %p1712_p1 = scmp.lt.s32.totalorder %s1318_s10, 3  ;;  %p1713_p2 = scmp.ge.s32.totalorder %s1318_s10, 1 }
  0x37   : > { %s1715_s13 = sshll.u32 %s1314_s9, 8  ;;  %s1716_s11 = sshll.u32 %s1440_s21, 4 }
  0x38   : > { %p1493_p7 = pnand %p1713_p2, %p1712_p1  ;;  %s1502_s25 = scalar_lea.hbm %s1689_s1, %s1715_s13 }
  0x39   : > { %s319_s22 = scalar_lea.vmem [#allocation5], %s1716_s11  ;;  %s316_s26 = scalar_lea.sflag [#allocation6], %s1440_s21 }
  0x3a   : > { %s1714_s23 = scalar_select %p1493_p7, 1, 0 }
  0x3b   : > { %s329_s0 = sshll.u32 %s319_s22, 4  ;;  %s1202_s12 = scalar_lea.hbm %s1502_s25, 256  ;;  %s330_s0 = int_to_ptr.vmem [resolvable:$true] %s329_s0 }
  0x3c   : > { %p1203_p9 = scmp.ne.s32.totalorder %s1502_s25, %s1202_s12  ;;  %s1207_s13 = scalar_lea.hbm %s1689_s1, 512 }
  0x3d   : > { %p1208_p3 = scmp.lt.u32.totalorder %s1502_s25, %s1689_s1  ;;  %p1209_p6 = scmp.lt.u32.totalorder %s1207_s13, %s1202_s12 }
  0x3e   : > { %p1205_p11 = pnand %p1203_p9, %p1174_p5  ;;  %p1211_p10 = scmp.lt.u32.totalorder %s1202_s12, %s1502_s25 }
  0x3f   : > { %p1210_p4 = por %p1209_p6, %p1208_p3 }
  0x40   : > { %p1206_p13 = pneg %p1205_p11 }
  0x41   : > { %p1212_p12 = por %p1211_p10, %p1210_p4 }
  0x43   : > { %p1213_p1 = pnand %p1212_p12, %p1206_p13 }
  0x45   : > { %1216 = shalt.err (!%p1213_p1)
}
  0x46   : > { %s1217_s21 = scalar_lea.vmem %s330_s0, 256  ;;  %s1321_s11 = smov [#allocation5]  }
  0x47   : > { %p1218_p2 = scmp.ne.s32.totalorder %s330_s0, %s1217_s21  ;;  %s1222_s9 = sshll.u32 %s1321_s11, 4  ;;  %s1223_s9 = int_to_ptr.vmem [resolvable:$false] %s1222_s9 }
  0x48   : > { %s1224_s22 = scalar_lea.vmem %s1223_s9, 512  ;;  %p1225_p8 = scmp.lt.s32.totalorder %s330_s0, %s1223_s9 }
  0x49   : > { %p1220_p9 = pnand %p1218_p2, %p1174_p5  ;;  %p1226_p7 = scmp.lt.s32.totalorder %s1224_s22, %s1217_s21 }
  0x4b   : > { %p1221_p11 = pneg %p1220_p9  ;;  %p1227_p3 = por %p1226_p7, %p1225_p8 }
  0x4d   : > { %p1228_p6 = pnand %p1227_p3, %p1221_p11 }
  0x4f   : > { %1231 = shalt.err (!%p1228_p6)
}
  0x50   : > { %1058 = dma.hbm_to_vmem [thread:$0]  (!%p1457_p0), %s1502_s25, 256, %s330_s0, %s316_s26  }
  0x51   : > { %p1717_p13 = scmp.ne.s32.totalorder %s1714_s23, 0 }
  0x52   : > { %s1529_s12 = sand.u32 (!%p1717_p13), 1, %s1302_s28   ;;  %p1718_p5 = scmp.ne.s32.totalorder (!%p1717_p13), %s1707_s17, 0 }
  0x53   : > { %338 = sbr.rel (%p1717_p13) target bundleno = 1050 (0x41a), region = 52  ;;  %s341_s16 = scalar_lea.sflag (!%p1717_p13), [#allocation3], %s1529_s12 }
  0x5a   : > { %1285 = dma.done.wait (%p1718_p5), %s341_s16, 256  }
  0x5b   : > { %1287 = vsyncadd (%p1718_p5), %s341_s16, 4294967040  ;;  %s1008_s14 = sshll.u32 %s1529_s12, 4  ;;  %s350_s0 = scalar_lea.sflag [#allocation6], %s1529_s12 }
  0x5c   : > { %s353_s23 = scalar_lea.vmem [#allocation5], %s1008_s14 }
  0x5d   : > { %1289 = dma.done.wait (%p1718_p5), %s350_s0, 256  }
  0x5e   : > { %1291 = vsyncadd (%p1718_p5), %s350_s0, 4294967040  ;;  %v1322_v0 = vmov 0.0   ;;  %s1323_s25 = smov 124   ;;  %v1547_v1 = vld [vmem:[%s353_s23] sm:$0xff]  ;;  %v1549_v2 = vld [vmem:[%s353_s23 + $0x8] sm:$0xff]  ;;  %s1324_s26 = smov 126  }
  0x5f   : > { %423 = vrot.lane.b32.xlu1 %v1322_v0, %s1323_s25  ;;  %550 = vmatprep.mubr.f32.mxu0 %v1322_v0  ;;  %v1120_v3 = vpack.i.bf16 %v1547_v1, %v1322_v0  ;;  %v1125_v4 = vpack.i.bf16 %v1322_v0, %v1549_v2  ;;  %s1325_s17 = smov 4   ;;  %v1326_v8 = vmov 0.0|0.0   ;;  %vm419_vm0 = vcmask 1031168   ;;  %v433_v24 = vld [vmem:[%s1691_s3] sm:$0xff]  ;;  %s390_s13 = scalar_lea.vmem [#allocation7], %s1008_s14 }
  0x60   : > { %1039 = vmatprep.subr.bf16.mxu1 %v1326_v8  ;;  %vm429_vm1 = vcmask 1014784   ;;  %vm1327_vm2 = vmmov 0   ;;  %v1328_v22 = vmov 0   ;;  %vm463_vm3 = vcmask 31744   ;;  %v432_v51 = vld [vmem:[%s1690_s2] sm:$0xff]  ;;  %s886_s24 = sshll.u32 %s390_s13, 4  ;;  %s1641_s24 = int_to_ptr.vmem [resolvable:$true] %s886_s24 }
  0x61   : > { %1121 = vrot.lane.b32.xlu0 %v1120_v3, %s1324_s26  ;;  %1032 = vmatprep.mubr.msk.f32.mxu1 %vm1327_vm2, %v1322_v0  ;;  %vm482_vm4 = vcmask 195584   ;;  %v781_v54 = vld [vmem:[%s1694_s6] sm:$0xff]  ;;  %vm788_vm5 = vcmask 64512   ;;  %s870_s9 = scalar_lea.sflag [#allocation4], %s1529_s12  ;;  %p1719_p0 = scmp.ne.s32.totalorder %s1708_s18, 0 }
  0x62   : > { %1150 = vset.pattern.permute.xlu1 %v1328_v22  ;;  %1171 = vset.pattern.permute.xlu0 %v1328_v22  ;;  %s1329_s14 = smov [#allocation7]  }
  0x63   : > { %425 = vrot.lane.b32.xlu1 %v1547_v1, %s1323_s25  ;;  %s1236_s22 = sshll.u32 %s1329_s14, 4  ;;  %s1237_s22 = int_to_ptr.vmem [resolvable:$false] %s1236_s22 }
  0x64   : > { %s1238_s16 = scalar_lea.vmem %s1237_s22, 512  ;;  %p1239_p10 = scmp.lt.s32.totalorder %s1641_s24, %s1237_s22 }
  0x65   : > { %1126 = vrot.lane.b32.xlu0 %v1125_v4, %s1324_s26 }
  0x67   : > { %1131 = vrot.lane.b32.xlu1 %v1120_v3, %s1325_s17 }
  0x69   : > { %427 = vrot.lane.b32.xlu0 %v1549_v2, %s1323_s25 }
  0xd1   : > { %v424_v6 = vpop.permute.xlu1 %423 }
  0xd3   : > { %v1122_v5 = vpop.permute.xlu0 %1121 }
  0xd4   : > { %v1123_v9 = vunpack.i.l.bf16 %v1122_v5  ;;  %v1124_v12 = vunpack.i.h.bf16 %v1122_v5 }
  0xd5   : > { %v426_v16 = vpop.permute.xlu1 %425 }
  0xd6   : > { %v421_v18 = vsel %vm419_vm0, %v1123_v9, %v1124_v12  ;;  %v430_v20 = vsel %vm429_vm1, %v424_v6, %v426_v16 }
  0xd7   : > { %v1127_v7 = vpop.permute.xlu0 %1126 }
  0xd8   : > { %v1129_v10 = vunpack.i.h.bf16 %v1127_v7  ;;  %v1128_v11 = vunpack.i.l.bf16 %v1127_v7 }
  0xd9   : > { %v1132_v25 = vpop.permute.xlu1 %1131 }
  0xda   : > { %v1140_v13 = vpack.i.bf16 %v1128_v11, %v1549_v2  ;;  %v420_v14 = vsel %vm419_vm0, %v1129_v10, %v1123_v9  ;;  %v422_v17 = vsel %vm419_vm0, %v1124_v12, %v1128_v11  ;;  %v1134_v28 = vunpack.i.h.bf16 %v1132_v25 }
  0xdb   : > { %v1135_v15 = vpack.i.bf16 %v420_v14, %v1322_v0  ;;  %v1145_v19 = vpack.i.bf16 %v422_v17, %v421_v18  ;;  %v428_v21 = vpop.permute.xlu0 %427  ;;  %v1133_v29 = vunpack.i.l.bf16 %v1132_v25 }
  0xdc   : > { %1141 = vrot.lane.b32.xlu0 %v1140_v13, %s1325_s17  ;;  %v431_v23 = vsel %vm429_vm1, %v426_v16, %v428_v21 }
  0xdd   : > { %1136 = vrot.lane.b32.xlu1 %v1135_v15, %s1325_s17  ;;  %v465_v38 = vsel %vm463_vm3, %v1133_v29, %v1134_v28  ;;  %v669_v15 = vld [vmem:[%s1693_s5] sm:$0xff] }
  0xe0   : > { %1146 = vrot.lane.b32.xlu0 %v1145_v19, %s1325_s17 }
  0xe1   : > { %457 = vrot.lane.b32.xlu1 %v430_v20, %s1325_s17 }
  0xe4   : > { %459 = vrot.lane.b32.xlu0 %v431_v23, %s1325_s17 }
  0xe5   : > { %455 = vrot.lane.b32.xlu1 %v424_v6, %s1325_s17 }
  0xe8   : > { %461 = vrot.lane.b32.xlu0 %v428_v21, %s1325_s17 }
  0xe9   : > { %436 = vperm.xlu1 %1150, %v433_v24  }
  0xed   : > { %655 = vrot.lane.b32.xlu1 %v1322_v0, %s1324_s26 }
 0x14e   : > { %v1142_v26 = vpop.permute.xlu0 %1141 }
 0x14f   : > { %v1137_v27 = vpop.permute.xlu1 %1136  ;;  %v1143_v30 = vunpack.i.l.bf16 %v1142_v26  ;;  %v1144_v33 = vunpack.i.h.bf16 %v1142_v26 }
 0x150   : > { %v1138_v31 = vunpack.i.l.bf16 %v1137_v27  ;;  %v1139_v34 = vunpack.i.h.bf16 %v1137_v27 }
 0x151   : > { %v466_v39 = vsel %vm463_vm3, %v1134_v28, %v1143_v30 }
 0x152   : > { %v1147_v32 = vpop.permute.xlu0 %1146  ;;  %v464_v42 = vsel %vm463_vm3, %v1138_v31, %v1133_v29 }
 0x153   : > { %v1149_v35 = vunpack.i.h.bf16 %v1147_v32  ;;  %v1148_v36 = vunpack.i.l.bf16 %v1147_v32  ;;  %v458_v37 = vpop.permute.xlu1 %457 }
 0x155   : > { %v468_v40 = vsel %vm463_vm3, %v1148_v36, %v1149_v35  ;;  %v469_v41 = vsel %vm463_vm3, %v1149_v35, %v1144_v33  ;;  %v467_v43 = vsel %vm463_vm3, %v1139_v34, %v1148_v36  ;;  %v668_v36 = vld [vmem:[%s1692_s4] sm:$0xff] }
 0x156   : > { %v460_v44 = vpop.permute.xlu0 %459  ;;  %v1035_v45 = vpack.c.bf16 %v468_v40, %v465_v38  ;;  %v1040_v46 = vpack.c.bf16 %v469_v41, %v466_v39  ;;  %v1037_v47 = vpack.c.bf16 %v467_v43, %v464_v42 }
 0x157   : > { %v456_v48 = vpop.permute.xlu1 %455  ;;  %v471_v49 = vsel %vm463_vm3, %v458_v37, %v460_v44 }
 0x158   : > { %1036 = vmatprep.subr.bf16.mxu0 %v1035_v45  ;;  %1041 = vmatpush3.bf16.msra.mxu1 %v1040_v46  ;;  %v470_v53 = vsel %vm463_vm3, %v456_v48, %v458_v37 }
 0x159   : > { %1038 = vmatpush1.bf16.msra.mxu0 %v1037_v47  ;;  %1030 = vmatprep.subr.mxu1 %v1322_v0 }
 0x15a   : > { %v462_v50 = vpop.permute.xlu0 %461  ;;  %490 = vmatprep.subr.mxu0 %v471_v49 }
 0x15b   : > { %v472_v52 = vsel %vm463_vm3, %v460_v44, %v462_v50 }
 0x15c   : > { %1031 = vmatpush3.msra.mxu1 %v472_v52 }
 0x15d   : > { %491 = vmatpush1.msra.mxu0 %v470_v53  ;;  %1033 = vmatmul.mubr.msk.f32.vlgmr.msra.gmra.mrb[0].mxu1 %vm482_vm4, %v432_v51 }
 0x15e   : > { %1010 = vmatmul.mubr.msk.f32.vlgmr.msra.gmra.mrb[0].mxu0 %vm482_vm4, %v432_v51  ;;  %792 = vmatprep.subr.mxu1 %v1549_v2 }
 0x15f   : > { %793 = vmatpush1.msra.mxu1 %v1547_v1  ;;  %856 = vmatprep.mubr.f32.mxu1 %v1322_v0 }
 0x160   : > { %772 = vmatprep.mubr.f32.mxu0 %v1322_v0 }
 0x161   : > { %1013 = vmatmul.mubr.msk.f32.vlgmr.msra.gmra.mrb[2].mxu1 %vm788_vm5, %v781_v54 }
 0x168   : > { %v437_v55 = vpop.permute.xlu1 %436 }
 0x16c   : > { %v656_v5 = vpop.permute.xlu1 %655 }
 0x230   : > { %v623_v56 = vpop.f32.mrb[0].mxu1 }
 0x231   : > { %v552_v57 = vpop.f32.mrb[0].mxu0  ;;  %v1034_v58 = vpop.f32.mrb[1].mxu1  ;;  %v624_v59 = vadd.f32 %v623_v56, %v437_v55 }
 0x232   : > { %v554_v60 = vpop.f32.mrb[1].mxu0 }
 0x233   : > { %v629_v61 = vmax.f32 %v624_v59, 0.0  ;;  %v555_v62 = vadd.f32 %v554_v60, %v437_v55 }
 0x234   : > { %v858_v10 = vpop.f32.mrb[2].mxu1 }
 0x235   : > { %v628_v63 = vmax.f32 %v555_v62, 0.0  ;;  %665 = vrot.lane.b32.xlu1 %v629_v61, %s1323_s25  ;;  %v860_v11 = vpop.f32.mrb[3].mxu1 }
 0x237   : > { %v1151_v1 = vpack.i.bf16 %v629_v61, %v628_v63 }
 0x239   : > { %1152 = vrot.lane.b32.xlu0 %v1151_v1, %s1324_s26 }
 0x23d   : > { %663 = vrot.lane.b32.xlu0 %v628_v63, %s1323_s25 }
 0x241   : > { %1157 = vrot.lane.b32.xlu0 %v1151_v1, %s1325_s17 }
 0x2a7   : > { %v666_v13 = vpop.permute.xlu1 %665 }
 0x2ab   : > { %v1153_v2 = vpop.permute.xlu0 %1152 }
 0x2ac   : > { %v1155_v3 = vunpack.i.h.bf16 %v1153_v2  ;;  %v1154_v4 = vunpack.i.l.bf16 %v1153_v2 }
 0x2ae   : > { %v662_v6 = vsel %vm419_vm0, %v1154_v4, %v1155_v3  ;;  %v661_v7 = vsel %vm419_vm0, %v656_v5, %v1154_v4 }
 0x2af   : > { %v1161_v8 = vpack.i.bf16 %v1155_v3, %v662_v6  ;;  %v1166_v9 = vpack.i.bf16 %v661_v7, %v1322_v0  ;;  %v664_v12 = vpop.permute.xlu0 %663  ;;  %v782_v0 = vld [vmem:[%s1695_s7] sm:$0xff] }
 0x2b0   : > { %v667_v14 = vsel %vm429_vm1, %v664_v12, %v666_v13 }
 0x2b1   : > { %1162 = vrot.lane.b32.xlu1 %v1161_v8, %s1325_s17  ;;  %1167 = vrot.lane.b32.xlu0 %v1166_v9, %s1325_s17 }
 0x2b3   : > { %v1158_v16 = vpop.permute.xlu0 %1157 }
 0x2b4   : > { %v1160_v17 = vunpack.i.h.bf16 %v1158_v16  ;;  %v1159_v18 = vunpack.i.l.bf16 %v1158_v16 }
 0x2b5   : > { %689 = vrot.lane.b32.xlu1 %v667_v14, %s1325_s17  ;;  %691 = vrot.lane.b32.xlu0 %v666_v13, %s1325_s17 }
 0x2b6   : > { %v694_v27 = vsel %vm463_vm3, %v1159_v18, %v1160_v17 }
 0x2b9   : > { %687 = vrot.lane.b32.xlu1 %v664_v12, %s1325_s17  ;;  %672 = vperm.xlu0 %1171, %v669_v15   ;;  %s1021_s17 = sshll.u32 %s1310_s30, 8  ;;  %s1232_s30 = scalar_lea.vmem %s1641_s24, 256 }
 0x2ba   : > { %s1639_s11 = scalar_lea.hbm %s1696_s8, %s1021_s17  ;;  %p1233_p8 = scmp.ne.s32.totalorder %s1641_s24, %s1232_s30 }
 0x2bb   : > { %p1240_p12 = scmp.lt.s32.totalorder %s1238_s16, %s1232_s30 }
 0x2bc   : > { %p1234_p7 = pnand %p1233_p8, %p1719_p0 }
 0x2bd   : > { %785 = vperm.xlu1 %1150, %v782_v0   ;;  %p1241_p1 = por %p1240_p12, %p1239_p10 }
 0x2be   : > { %p1235_p4 = pneg %p1234_p7 }
 0x2c0   : > { %p1242_p2 = pnand %p1241_p1, %p1235_p4 }
 0x323   : > { %v1163_v19 = vpop.permute.xlu1 %1162  ;;  %v1168_v20 = vpop.permute.xlu0 %1167 }
 0x324   : > { %v1165_v21 = vunpack.i.h.bf16 %v1163_v19  ;;  %v1164_v22 = vunpack.i.l.bf16 %v1163_v19  ;;  %v1170_v23 = vunpack.i.h.bf16 %v1168_v20  ;;  %v1169_v24 = vunpack.i.l.bf16 %v1168_v20 }
 0x326   : > { %v695_v25 = vsel %vm463_vm3, %v1170_v23, %v1164_v22  ;;  %v693_v26 = vsel %vm463_vm3, %v1169_v24, %v1159_v18  ;;  %v696_v28 = vsel %vm463_vm3, %v1164_v22, %v1165_v21 }
 0x327   : > { %v1044_v29 = vpack.c.bf16 %v695_v25, %v693_v26  ;;  %v690_v30 = vpop.permute.xlu1 %689  ;;  %v692_v31 = vpop.permute.xlu0 %691  ;;  %v1042_v32 = vpack.c.bf16 %v696_v28, %v694_v27 }
 0x328   : > { %v698_v33 = vsel %vm463_vm3, %v690_v30, %v692_v31 }
 0x329   : > { %1043 = vmatprep.subr.bf16.mxu0 %v1042_v32 }
 0x32a   : > { %1045 = vmatpush1.bf16.msra.mxu0 %v1044_v29 }
 0x32b   : > { %v688_v34 = vpop.permute.xlu1 %687  ;;  %712 = vmatprep.subr.mxu0 %v698_v33 }
 0x32c   : > { %v697_v35 = vsel %vm463_vm3, %v688_v34, %v690_v30 }
 0x32e   : > { %713 = vmatpush1.msra.mxu0 %v697_v35 }
 0x32f   : > { %1012 = vmatmul.mubr.msk.f32.vlgmr.msra.gmra.mrb[2].mxu0 %vm482_vm4, %v668_v36 }
 0x338   : > { %v673_v37 = vpop.permute.xlu0 %672 }
 0x33c   : > { %v786_v38 = vpop.permute.xlu1 %785 }
 0x33d   : > { %v859_v43 = vadd.f32 %v858_v10, %v786_v38  ;;  %v861_v45 = vadd.f32 %v860_v11, %v786_v38 }
 0x402   : > { %v774_v39 = vpop.f32.mrb[2].mxu0 }
 0x403   : > { %v775_v40 = vadd.f32 %v774_v39, %v673_v37  ;;  %v776_v41 = vpop.f32.mrb[3].mxu0 }
 0x404   : > { %v777_v42 = vadd.f32 %v776_v41, %v673_v37 }
 0x405   : > { %v779_v44 = vmax.f32 %v775_v40, 0.0 }
 0x406   : > { %v780_v46 = vmax.f32 %v777_v42, 0.0 }
 0x407   : > { %v863_v47 = vadd.f32 %v859_v43, %v779_v44 }
 0x408   : > { %v864_v48 = vadd.f32 %v861_v45, %v780_v46 }
 0x409   : > { %v865_v49 = vmax.f32 %v863_v47, 0.0 }
 0x40a   : > { %v866_v50 = vmax.f32 %v864_v48, 0.0 }
 0x40b   : > { %867 = vst [vmem:[%s390_s13] sm:$0xff] %v865_v49 }
 0x40c   : > { %868 = vst [vmem:[%s390_s13 + $0x8] sm:$0xff] %v866_v50 }
 0x40d   : > { %1245 = shalt.err (!%p1242_p2)
}
 0x40e   : > { %s1246_s12 = scalar_lea.hbm %s1639_s11, 256  ;;  %s1250_s25 = scalar_lea.hbm %s1696_s8, 512 }
 0x40f   : > { %p1247_p9 = scmp.ne.s32.totalorder %s1639_s11, %s1246_s12  ;;  %p1251_p6 = scmp.lt.u32.totalorder %s1639_s11, %s1696_s8 }
 0x410   : > { %p1252_p13 = scmp.lt.u32.totalorder %s1250_s25, %s1246_s12  ;;  %p1254_p8 = scmp.lt.u32.totalorder %s1246_s12, %s1639_s11 }
 0x411   : > { %p1248_p11 = pnand %p1247_p9, %p1719_p0 }
 0x412   : > { %p1253_p5 = por %p1252_p13, %p1251_p6 }
 0x413   : > { %p1249_p3 = pneg %p1248_p11 }
 0x414   : > { %p1255_p7 = por %p1254_p8, %p1253_p5 }
 0x416   : > { %p1256_p4 = pnand %p1255_p7, %p1249_p3 }
 0x418   : > { %1259 = shalt.err (!%p1256_p4)
}
 0x419   : > { %1050 = dma.vmem_to_hbm [thread:$0]  (%p1719_p0), %s1641_s24, 256, %s1639_s11, %s870_s9  }
 0x41a PF: > { %s898_s13 = sand.u32 1, %s1298_s27   ;;  %p1720_p10 = scmp.ne.s32.totalorder %s1709_s20, 0 }
 0x41b   : > { %p1721_p12 = scmp.ge.s32.totalorder %s1318_s10, 2  ;;  %s899_s15 = scalar_lea.sflag [#allocation4], %s898_s13 }
 0x41d   : > { %p1060_p1 = pnand %p1721_p12, %p1720_p10 }
 0x41f   : > { %1293 = dma.done.wait (!%p1060_p1), %s899_s15, 256  }
 0x420   : > { %1295 = vsyncadd (!%p1060_p1), %s899_s15, 4294967040  ;;  %s27_s10 = sadd.s32 1, %s1318_s10   ;;  %s1722_s30 = sld [smem:[#allocation11_spill]] }
 0x421   : > { %p24_p2 = scmp.ge.s32.totalorder %s27_s10, 4   ;;  %s1723_s9 = sld [smem:[#allocation12_spill]] }
 0x422   : > { %s1724_s27 = smov %s1302_s28  ;;  %s1725_s28 = smov %s1306_s29 }
 0x423   : > { %s1726_s29 = smov %s1431_s19  ;;  %26 = sbr.rel (!%p24_p2) target bundleno = 10 (0xa), region = 118 }
 0x42a   :  { %904 = vsyncpa [#allocation3], 1 }
 0x42b   :  { %906 = vsyncpa [#allocation3 + $0x1], 1 }
 0x42c   :  { %907 = vsyncpa [#allocation6], 1 }
 0x42d   :  { %909 = vsyncpa [#allocation6 + $0x1], 1 }
 0x42e   :  { %910 = vsyncpa [#allocation4], 1 }
 0x42f   :  { %912 = vsyncpa [#allocation4 + $0x1], 1 }

</bundles_post_ra>
